<compile_context>
chip_gen: v7x
topology: tpu7x:2x2x1
jax: 0.10.0
libtpu: 0.0.40
codegen_flags: <defaults>
</compile_context>

<pallas_src>
import functools

import numpy as np
import jax
import jax.numpy as jnp
from jax import lax
from jax.experimental import pallas as pl
from jax.experimental.pallas import tpu as pltpu

_LANES = 128                       # lane width (last dim)
_MAX_PAR = 2                       # megacore split on v7x; no-op on v5e/v6e
_LN10 = np.float32(np.log(10.0))


def _density_loss_kernel(x_ref, y_ref, out_ref, *, rows, block_rows,
                         tiles_per_core, acc_sub, needs_mask):
    """Accumulate per-(sublane,lane) partial sums of |10^x - 10^y|.

    Grid = (parallel_core, reduction_step). out_ref is the (acc_sub, 128)
    accumulator block for this parallel slot; it stays resident across the
    inner ("arbitrary") reduction axis.
    """
    c = pl.program_id(0)
    i = pl.program_id(1)

    @pl.when(i == 0)
    def _():
        out_ref[...] = jnp.zeros_like(out_ref)

    # Stream native dtype from HBM; upcast to f32 in VMEM (free VPU op).
    x = x_ref[...].astype(jnp.float32)
    y = y_ref[...].astype(jnp.float32)

    if needs_mask:
        # Zero the *inputs* for logical rows >= rows: exp(0)=1 on both sides so
        # the padded contribution is exactly 0, and jnp.where (a select) blocks
        # any garbage / NaN living in the out-of-bounds part of the block.
        block_start = (c * tiles_per_core + i) * block_rows
        row_idx = block_start + lax.broadcasted_iota(
            jnp.int32, (block_rows, _LANES), 0)
        valid = row_idx < rows
        x = jnp.where(valid, x, 0.0)
        y = jnp.where(valid, y, 0.0)

    # 10**v == exp(v * ln 10)  -> EUP transcendental (separate bundle slot).
    diff = jnp.abs(jnp.exp(x * _LN10) - jnp.exp(y * _LN10))

    # Pure VPU adds: collapse (block_rows, 128) into an (acc_sub, 128) partial
    # sum.  acc_sub up to 32 rows => 4 independent (8,128) vreg add chains.
    out_ref[...] += jnp.sum(diff.reshape(-1, acc_sub, _LANES), axis=0)


def density_loss(x, y, *, max_block_rows=4096):
    """L1 loss between 10**x and 10**y (mean reduction), via a Pallas kernel."""
    assert x.shape == y.shape
    n = int(np.prod(x.shape))
    assert n > 0

    xf = jnp.ravel(x)                       # free (contiguous reshape)
    yf = jnp.ravel(y)

    rows = n // _LANES                      # full lane-dense rows
    tail = n - rows * _LANES                # < 128 leftover elements

    total = jnp.float32(0.0)

    if rows > 0:
        if tail:
            # Ragged n: one bulk prefix copy (only in this rare case); the
            # <128-element tail is handled with plain jnp below.
            x2 = xf[: rows * _LANES].reshape(rows, _LANES)
            y2 = yf[: rows * _LANES].reshape(rows, _LANES)
        else:
            x2 = xf.reshape(rows, _LANES)
            y2 = yf.reshape(rows, _LANES)

        # --- tiling (all static Python ints) -------------------------------
        # block_rows: multiple of 16 (works for f32 and 16-bit dtypes).
        mbr = max(16, (int(max_block_rows) // 16) * 16)
        block_rows = min(mbr, ((rows + 15) // 16) * 16)
        tiles_total = -(-rows // block_rows)
        num_par = max(1, min(_MAX_PAR, tiles_total))   # only split if >1 tile
        tiles_per_core = -(-tiles_total // num_par)
        coverage = num_par * tiles_per_core * block_rows
        needs_mask = coverage != rows                  # static
        acc_sub = 32 if block_rows % 32 == 0 else 16
        max_block = tiles_total - 1

        def in_map(c, i):
            t = c * tiles_per_core + i
            if needs_mask:
                # Clamp logically-out-of-range tiles to a valid block; their
                # contribution is fully masked to zero inside the kernel.
                t = jnp.minimum(t, max_block)
            return (t, 0)

        kernel = functools.partial(
            _density_loss_kernel, rows=rows, block_rows=block_rows,
            tiles_per_core=tiles_per_core, acc_sub=acc_sub,
            needs_mask=needs_mask)

        partials = pl.pallas_call(
            kernel,
            out_shape=jax.ShapeDtypeStruct((num_par * acc_sub, _LANES),
                                           jnp.float32),
            grid_spec=pltpu.PrefetchScalarGridSpec(
                num_scalar_prefetch=0,
                grid=(num_par, tiles_per_core),
                in_specs=[
                    pl.BlockSpec((block_rows, _LANES), in_map),
                    pl.BlockSpec((block_rows, _LANES), in_map),
                ],
                # One resident lane-dense accumulator block per parallel slot.
                out_specs=pl.BlockSpec((acc_sub, _LANES), lambda c, i: (c, 0)),
            ),
            compiler_params=pltpu.CompilerParams(
                dimension_semantics=("parallel", "arbitrary")),
        )(x2, y2)

        total = total + jnp.sum(partials)

    if tail:
        xt = xf[rows * _LANES:].astype(jnp.float32)
        yt = yf[rows * _LANES:].astype(jnp.float32)
        total = total + jnp.sum(jnp.abs(10.0 ** xt - 10.0 ** yt))

    # Tiny epilogue: single scalar scale by 1/N (mean reduction).
    return total * np.float32(1.0 / n)


if __name__ == "__main__":
    key = jax.random.PRNGKey(0)
    kx, ky = jax.random.split(key)

    def ref_loss(a, b):
        af = a.astype(jnp.float32)
        bf = b.astype(jnp.float32)
        return jnp.mean(jnp.abs(10.0 ** af - 10.0 ** bf))

    # 1) aligned f32 case (no masking, single tile, single core)
    x = jax.random.normal(kx, (2, 4, 16, 16), dtype=jnp.float32) * 0.5
    y = jax.random.normal(ky, (2, 4, 16, 16), dtype=jnp.float32) * 0.5
    loss = density_loss(x, y)
    jax.block_until_ready(loss)
    assert jnp.allclose(loss, ref_loss(x, y), rtol=1e-5, atol=1e-6), \
        (loss, ref_loss(x, y))

    # 2) multi-step accumulation + 2-way parallel axis, exact coverage (no mask)
    x2 = jax.random.normal(kx, (4, 4, 32, 32), dtype=jnp.float32) * 0.5
    y2 = jax.random.normal(ky, (4, 4, 32, 32), dtype=jnp.float32) * 0.5
    loss2 = density_loss(x2, y2, max_block_rows=32)
    jax.block_until_ready(loss2)
    assert jnp.allclose(loss2, ref_loss(x2, y2), rtol=1e-5, atol=1e-6), \
        (loss2, ref_loss(x2, y2))

    # 3) bf16 streaming: native-dtype HBM blocks, f32 math in-kernel
    xb = (jax.random.normal(kx, (2, 4, 16, 16), dtype=jnp.float32) * 0.5
          ).astype(jnp.bfloat16)
    yb = (jax.random.normal(ky, (2, 4, 16, 16), dtype=jnp.float32) * 0.5
          ).astype(jnp.bfloat16)
    loss3 = density_loss(xb, yb)
    jax.block_until_ready(loss3)
    assert jnp.allclose(loss3, ref_loss(xb, yb), rtol=1e-5, atol=1e-6), \
        (loss3, ref_loss(xb, yb))

    # 4) ragged shape: in-kernel row masking + tiny flat tail in the wrapper
    x4 = jax.random.normal(kx, (3, 5, 7, 11), dtype=jnp.float32) * 0.5
    y4 = jax.random.normal(ky, (3, 5, 7, 11), dtype=jnp.float32) * 0.5
    loss4 = density_loss(x4, y4)
    jax.block_until_ready(loss4)
    assert jnp.allclose(loss4, ref_loss(x4, y4), rtol=1e-5, atol=1e-6), \
        (loss4, ref_loss(x4, y4))

    print("KERNEL_OK")
</pallas_src>

<mosaic_0001>
module attributes {stable_mosaic.version = 11 : i64} {
  func.func @_density_loss_kernel(%arg0: i32, %arg1: i32, %arg2: memref<16x128xf32, #tpu.memory_space<vmem>>, %arg3: memref<16x128xf32, #tpu.memory_space<vmem>>, %arg4: memref<16x128xf32, #tpu.memory_space<vmem>>) attributes {dimension_semantics = [#tpu.dimension_semantics<parallel>, #tpu.dimension_semantics<arbitrary>], iteration_bounds = array<i64: 1, 1>, scalar_prefetch = 0 : i64, scratch_operands = 0 : i64, tpu.core_type = #tpu.core_type<tc>, window_params = [{transform_indices = @transform_0, window_bounds = array<i64: 16, 128>}, {transform_indices = @transform_1, window_bounds = array<i64: 16, 128>}, {transform_indices = @transform_2, window_bounds = array<i64: 16, 128>}]} {
    %c0_i32 = arith.constant 0 : i32
    %0 = arith.cmpi eq, %arg1, %c0_i32 : i32
    %1 = arith.extui %0 : i1 to i32
    %c0_i32_0 = arith.constant 0 : i32
    %2 = arith.cmpi ne, %1, %c0_i32_0 : i32
    scf.if %2 {
      %cst_10 = arith.constant 0.000000e+00 : f32
      %18 = vector.broadcast %cst_10 : f32 to vector<16x128xf32>
      %c0_11 = arith.constant 0 : index
      %c0_12 = arith.constant 0 : index
      %19 = vector.load %arg4[%c0_11, %c0_12] : memref<16x128xf32, #tpu.memory_space<vmem>>, vector<16x128xf32>
      tpu.vector_store %arg4[%c0_11, %c0_12], %18 {strides = array<i32>} : memref<16x128xf32, #tpu.memory_space<vmem>>, vector<16x128xf32>,
    } else {
    }
    %c0 = arith.constant 0 : index
    %c0_1 = arith.constant 0 : index
    %3 = vector.load %arg2[%c0, %c0_1] : memref<16x128xf32, #tpu.memory_space<vmem>>, vector<16x128xf32>
    %c0_2 = arith.constant 0 : index
    %c0_3 = arith.constant 0 : index
    %4 = vector.load %arg3[%c0_2, %c0_3] : memref<16x128xf32, #tpu.memory_space<vmem>>, vector<16x128xf32>
    %cst = arith.constant 2.30258512 : f32
    %5 = vector.broadcast %cst : f32 to vector<16x128xf32>
    %6 = arith.mulf %3, %5 : vector<16x128xf32>
    %7 = math.exp %6 : vector<16x128xf32>
    %cst_4 = arith.constant 2.30258512 : f32
    %8 = vector.broadcast %cst_4 : f32 to vector<16x128xf32>
    %9 = arith.mulf %4, %8 : vector<16x128xf32>
    %10 = math.exp %9 : vector<16x128xf32>
    %11 = arith.subf %7, %10 : vector<16x128xf32>
    %12 = math.absf %11 : vector<16x128xf32>
    %c0_5 = arith.constant 0 : index
    %c0_6 = arith.constant 0 : index
    %13 = vector.load %arg4[%c0_5, %c0_6] : memref<16x128xf32, #tpu.memory_space<vmem>>, vector<16x128xf32>
    %14 = vector.shape_cast %12 : vector<16x128xf32> to vector<1x16x128xf32>
    %cst_7 = arith.constant dense<0.000000e+00> : vector<16x128xf32>
    %15 = vector.multi_reduction <add>, %14, %cst_7 [0] : vector<1x16x128xf32> to vector<16x128xf32>
    %16 = arith.addf %13, %15 : vector<16x128xf32>
    %c0_8 = arith.constant 0 : index
    %c0_9 = arith.constant 0 : index
    %17 = vector.load %arg4[%c0_8, %c0_9] : memref<16x128xf32, #tpu.memory_space<vmem>>, vector<16x128xf32>
    tpu.vector_store %arg4[%c0_8, %c0_9], %16 {strides = array<i32>} : memref<16x128xf32, #tpu.memory_space<vmem>>, vector<16x128xf32>,
    return
  }
  func.func @transform_0(%arg0: i32, %arg1: i32) -> (i32, i32) {
    %c1_i32 = arith.constant 1 : i32
    %0 = arith.muli %arg0, %c1_i32 : i32
    %1 = arith.addi %0, %arg1 : i32
    %c0_i32 = arith.constant 0 : i32
    %c0_i32_0 = arith.constant 0 : i32
    return %1, %c0_i32 : i32, i32
  }
  func.func @transform_1(%arg0: i32, %arg1: i32) -> (i32, i32) {
    %c1_i32 = arith.constant 1 : i32
    %0 = arith.muli %arg0, %c1_i32 : i32
    %1 = arith.addi %0, %arg1 : i32
    %c0_i32 = arith.constant 0 : i32
    %c0_i32_0 = arith.constant 0 : i32
    return %1, %c0_i32 : i32, i32
  }
  func.func @transform_2(%arg0: i32, %arg1: i32) -> (i32, i32) {
    %c0_i32 = arith.constant 0 : i32
    %c0_i32_0 = arith.constant 0 : i32
    return %arg0, %c0_i32 : i32, i32
  }
}

</mosaic_0001>

<bundles_post_ra>
// kernel: tpu_custom_call.1
= control target key start
LH: loop header
LB: loop body
LE: loop exit
PB: predicated region body
PF: predicated region fallthrough
CT: control target
= control target key end

     0   :  { %7 = vsyncpa [#allocation3], 0  ;;  %s255_s0 = inlined_call_operand.hbm [shape: f32[16,128], index: 0, kind: input, shape index: {}]   ;;  %s256_s1 = inlined_call_operand.hbm [shape: f32[16,128], index: 1, kind: input, shape index: {}]   ;;  %s257_s2 = inlined_call_operand.hbm [shape: f32[16,128], index: 2, kind: output, shape index: {}]  }
   0x1   :  { %8 = vsyncpa [#allocation6], 0 }
   0x2   :  { %9 = vsyncpa [#allocation4], 0  ;;  %s190_s9 = smov [#allocation2]   ;;  %s118_s13 = scalar_lea.hbm %s255_s0, 256 }
   0x3   :  { %s19_s10 = sshll.u32 %s190_s9, 4  ;;  %p119_p0 = scmp.ne.s32.totalorder %s255_s0, %s118_s13  ;;  %s20_s10 = int_to_ptr.vmem [resolvable:$true] %s19_s10 }
   0x4   :  { %p122_p1 = scmp.lt.u32.totalorder %s118_s13, %s255_s0 }
   0x6   :  { %p124_p2 = pnand %p122_p1, %p119_p0 }
   0x8   :  { %127 = shalt.err (!%p124_p2)
}
   0x9   :  { %s128_s18 = scalar_lea.vmem %s20_s10, 256  ;;  %p133_p4 = scmp.lt.s32.totalorder %s20_s10, %s20_s10 }
   0xa   :  { %p129_p3 = scmp.ne.s32.totalorder %s20_s10, %s128_s18  ;;  %p134_p5 = scmp.lt.s32.totalorder %s128_s18, %s128_s18 }
   0xc   :  { %p135_p6 = por %p134_p5, %p133_p4 }
   0xe   :  { %p136_p7 = pnand %p135_p6, %p129_p3 }
  0x10   :  { %139 = shalt.err (!%p136_p7)
}
  0x11   :  { %s191_s19 = smov 128   ;;  %s192_s20 = smov 8  }
  0x12   :  { %25 = dma.hbm_to_vmem [thread:$0]  %s255_s0, 256, %s20_s10, [#allocation3], %s191_s19, %s191_s19, %s192_s20  }
  0x13   :  { %s193_s23 = smov [#allocation5]   ;;  %s140_s27 = scalar_lea.hbm %s256_s1, 256 }
  0x14   :  { %s35_s24 = sshll.u32 %s193_s23, 4  ;;  %p141_p8 = scmp.ne.s32.totalorder %s256_s1, %s140_s27  ;;  %s36_s24 = int_to_ptr.vmem [resolvable:$true] %s35_s24 }
  0x15   :  { %p144_p9 = scmp.lt.u32.totalorder %s140_s27, %s256_s1 }
  0x17   :  { %p146_p10 = pnand %p144_p9, %p141_p8 }
  0x19   :  { %149 = shalt.err (!%p146_p10)
}
  0x1a   :  { %s150_s4 = scalar_lea.vmem %s36_s24, 256  ;;  %p155_p12 = scmp.lt.s32.totalorder %s36_s24, %s36_s24 }
  0x1b   :  { %p151_p11 = scmp.ne.s32.totalorder %s36_s24, %s150_s4  ;;  %p156_p13 = scmp.lt.s32.totalorder %s150_s4, %s150_s4 }
  0x1d   :  { %p157_p0 = por %p156_p13, %p155_p12 }
  0x1f   :  { %p158_p1 = pnand %p157_p0, %p151_p11 }
  0x21   :  { %161 = shalt.err (!%p158_p1)
}
  0x22   :  { %41 = dma.hbm_to_vmem [thread:$0]  %s256_s1, 256, %s36_s24, [#allocation6], %s191_s19, %s191_s19, %s192_s20  }
  0x23   :  { %184 = dma.done.wait [#allocation3], 256  }
  0x24   :  { %185 = vsyncadd [#allocation3], 4294967040 }
  0x25   :  { %186 = dma.done.wait [#allocation6], 256  }
  0x26   :  { %187 = vsyncadd [#allocation6], 4294967040  ;;  %v58_v0 = vld [vmem:[#allocation2] sm:$0xff]  ;;  %v60_v1 = vld [vmem:[#allocation5] sm:$0xff]  ;;  %s194_s1 = smov [#allocation7]  }
  0x27   :  { %v59_v2 = vld [vmem:[#allocation2 + $0x8] sm:$0xff]  ;;  %v62_v3 = vmul.f32 2.3025851, %v58_v0  ;;  %v68_v4 = vmul.f32 2.3025851, %v60_v1  ;;  %v61_v5 = vld [vmem:[#allocation5 + $0x8] sm:$0xff] }
  0x28   :  { %v63_v6 = vmul.f32 2.3025851, %v59_v2  ;;  %v69_v7 = vmul.f32 2.3025851, %v61_v5  ;;  %s91_s6 = sshll.u32 %s194_s1, 4  ;;  %s92_s6 = int_to_ptr.vmem [resolvable:$true] %s91_s6 }
  0x29   :  { %v64_v8 = vmul.f32 1.442695, %v62_v3  ;;  %v70_v9 = vmul.f32 1.442695, %v68_v4  ;;  %s162_s7 = scalar_lea.vmem %s92_s6, 256  ;;  %p167_p3 = scmp.lt.s32.totalorder %s92_s6, %s92_s6 }
  0x2a   :  { %v66_v10 = vmul.f32 1.442695, %v63_v6  ;;  %v72_v11 = vmul.f32 1.442695, %v69_v7  ;;  %p163_p2 = scmp.ne.s32.totalorder %s92_s6, %s162_s7  ;;  %p168_p4 = scmp.lt.s32.totalorder %s162_s7, %s162_s7 }
  0x2b   :  { %110 = vpow2.f32 %v64_v8 }
  0x2c   :  { %112 = vpow2.f32 %v70_v9  ;;  %p169_p5 = por %p168_p4, %p167_p3 }
  0x2d   :  { %114 = vpow2.f32 %v66_v10 }
  0x2e   :  { %116 = vpow2.f32 %v72_v11  ;;  %p170_p6 = pnand %p169_p5, %p163_p2 }
  0x35   :  { %v111_v12 = vpop.eup %110 }
  0x36   :  { %v113_v13 = vpop.eup %112 }
  0x37   :  { %v115_v14 = vpop.eup %114  ;;  %v74_v15 = vsub.f32 %v111_v12, %v113_v13 }
  0x38   :  { %v117_v16 = vpop.eup %116 }
  0x39   :  { %v76_v17 = vand.u32 2147483647, %v74_v15  ;;  %v75_v18 = vsub.f32 %v115_v14, %v117_v16 }
  0x3b   :  { %v77_v19 = vand.u32 2147483647, %v75_v18  ;;  %84 = vst [vmem:[#allocation7] sm:$0xff] %v76_v17 }
  0x3d   :  { %85 = vst [vmem:[#allocation7 + $0x8] sm:$0xff] %v77_v19 }
  0x3e   :  { %173 = shalt.err (!%p170_p6)
}
  0x3f   :  { %s174_s10 = scalar_lea.hbm %s257_s2, 256 }
  0x40   :  { %p175_p7 = scmp.ne.s32.totalorder %s257_s2, %s174_s10  ;;  %p178_p8 = scmp.lt.u32.totalorder %s174_s10, %s257_s2 }
  0x42   :  { %p180_p9 = pnand %p178_p8, %p175_p7 }
  0x44   :  { %183 = shalt.err (!%p180_p9)
}
  0x45   :  { %97 = dma.vmem_to_hbm [thread:$0]  %s92_s6, 256, %s257_s2, [#allocation4], %s191_s19, %s191_s19, %s192_s20  }
  0x46   :  { %188 = dma.done.wait [#allocation4], 256  }
  0x47   :  { %189 = vsyncadd [#allocation4], 4294967040 }
  0x48   :  { %101 = vsyncpa [#allocation3], 1 }
  0x49   :  { %102 = vsyncpa [#allocation6], 1 }
  0x4a   :  { %103 = vsyncpa [#allocation4], 1 }

</bundles_post_ra>
